<compile_context>
chip_gen: v7x
topology: tpu7x:2x2x1
jax: 0.10.0
libtpu: 0.0.40
codegen_flags: <defaults>
</compile_context>

<pallas_src>
import functools

import jax
import jax.numpy as jnp
from jax.experimental import pallas as pl
from jax.experimental.pallas import tpu as pltpu


def _enc_kernel(x_ref, w0_ref, b0_ref, w1_ref, b1_ref, w2_ref, b2_ref,
                x_out_ref, err_ref, *, batch, tile_b, mask_rows):
    neg_slope = jnp.float32(0.02)

    # ff_0 + LeakyReLU  (bf16 MXU operands, f32 accumulation)
    h = jnp.dot(x_ref[...].astype(jnp.bfloat16), w0_ref[...],
                preferred_element_type=jnp.float32)
    h = h + b0_ref[...]
    h = jnp.where(h > 0, h, neg_slope * h)

    # ff_1 + LeakyReLU
    h = jnp.dot(h.astype(jnp.bfloat16), w1_ref[...],
                preferred_element_type=jnp.float32)
    h = h + b1_ref[...]
    h = jnp.where(h > 0, h, neg_slope * h)

    # ff_2 + LeakyReLU
    h = jnp.dot(h.astype(jnp.bfloat16), w2_ref[...],
                preferred_element_type=jnp.float32)
    h = h + b2_ref[...]
    h = jnp.where(h > 0, h, neg_slope * h)

    # tanh (the `torch.tahn` typo is interpreted as tanh) -- f32 path
    h = jnp.tanh(h)

    # QuantizerFunc, npoints=4: round to 4 decimals.
    # Keep the divide by 1e4 (do not replace with *1e-4: rounding differs).
    scale = jnp.float32(1e4)
    xq = jnp.round(h * scale) / scale
    err = jnp.abs(h - xq)

    x_out_ref[...] = xq  # xe is bit-identical; not written again (aliased in wrapper)

    # Exclude padded batch rows from the error sum (only present when B was padded).
    if mask_rows:
        row = (pl.program_id(0) * tile_b
               + jax.lax.broadcasted_iota(jnp.int32, err.shape, 0))
        err = jnp.where(row < batch, err, jnp.float32(0.0))

    # Per-tile partial sum -> SMEM scalar slot; final sum / B done in wrapper.
    err_ref[0, 0] = jnp.sum(err)


def enc_conv_res_block32(x, params, *, tile_b=None):
    """x: (B, input_size) float32. params: w{i}t stored as (in, out), b{i} as (1, out)."""
    B, D_in = x.shape

    # Fill the MXU M dimension when the batch allows; small batches use one tile.
    if tile_b is None:
        tile_b = 256 if B >= 256 else B
    num_tiles = -(-B // tile_b)
    B_pad = num_tiles * tile_b
    if B_pad != B:
        x = jnp.pad(x, ((0, B_pad - B), (0, 0)))

    # bf16 weights: MXU-friendly and halves weight DMA bytes; biases stay f32.
    w0t = params["w0t"].astype(jnp.bfloat16)
    w1t = params["w1t"].astype(jnp.bfloat16)
    w2t = params["w2t"].astype(jnp.bfloat16)
    b0, b1, b2 = params["b0"], params["b1"], params["b2"]

    kernel = functools.partial(
        _enc_kernel, batch=B, tile_b=tile_b, mask_rows=(B_pad != B))

    # Weights/biases: constant index_map -> stay resident across batch tiles.
    resident = lambda shape: pl.BlockSpec(shape, lambda i: (0, 0))

    x_out_pad, err_partials = pl.pallas_call(
        kernel,
        out_shape=(
            jax.ShapeDtypeStruct((B_pad, 128), jnp.float32),   # x (== xe)
            jax.ShapeDtypeStruct((num_tiles, 1), jnp.float32),  # per-tile err sums
        ),
        grid=(num_tiles,),
        in_specs=[
            pl.BlockSpec((tile_b, D_in), lambda i: (i, 0)),
            resident(w0t.shape), resident(b0.shape),
            resident(w1t.shape), resident(b1.shape),
            resident(w2t.shape), resident(b2.shape),
        ],
        out_specs=(
            pl.BlockSpec((tile_b, 128), lambda i: (i, 0)),
            pl.BlockSpec((1, 1), lambda i: (i, 0),
                         memory_space=pltpu.MemorySpace.SMEM),
        ),
        compiler_params=pltpu.CompilerParams(
            dimension_semantics=("parallel",),
            vmem_limit_bytes=32 << 20,
        ),
    )(x, w0t, b0, w1t, b1, w2t, b2)

    x_out = x_out_pad[:B] if B_pad != B else x_out_pad
    xe_out = x_out                                   # xe := x (same tensor in PyTorch)
    # diff and the final scalar reduction are finished on lane-dense x_out /
    # tiny partials in the wrapper (avoids masked vst.msk outputs in-kernel).
    diff = jnp.sum((x_out + x_out) == 0.0, axis=1).astype(jnp.int32)
    err_mean = jnp.sum(err_partials) / jnp.float32(B)
    return x_out, xe_out, diff, err_mean


def init_params(key, input_size):
    """Deterministic init mimicking nn.Linear default (uniform +/- 1/sqrt(fan_in))."""
    dims = [(input_size, 512), (512, 256), (256, 128)]
    params = {}
    for i, (fan_in, fan_out) in enumerate(dims):
        key, kw, kb = jax.random.split(key, 3)
        bound = 1.0 / (fan_in ** 0.5)
        # Stored already transposed to (in, out) for the x @ W layout.
        params[f"w{i}t"] = jax.random.uniform(
            kw, (fan_in, fan_out), jnp.float32, -bound, bound)
        params[f"b{i}"] = jax.random.uniform(
            kb, (1, fan_out), jnp.float32, -bound, bound)
    return params


if __name__ == "__main__":
    key = jax.random.PRNGKey(0)
    key, kx = jax.random.split(key)

    B, INPUT_SIZE = 8, 32
    x = jax.random.normal(kx, (B, INPUT_SIZE), jnp.float32)
    params = init_params(key, INPUT_SIZE)

    x_out, xe_out, diff, err_mean = enc_conv_res_block32(x, params)
    jax.block_until_ready((x_out, xe_out, diff, err_mean))

    assert x_out.shape == (B, 128)
    assert xe_out.shape == (B, 128)
    assert diff.shape == (B,)
    assert err_mean.shape == ()
    print("KERNEL_OK")
</pallas_src>

<mosaic_0001>
module attributes {stable_mosaic.version = 11 : i64} {
  func.func @_enc_kernel(%arg0: i32, %arg1: memref<8x32xf32, #tpu.memory_space<vmem>>, %arg2: memref<32x512xbf16, #tpu.memory_space<vmem>>, %arg3: memref<1x512xf32, #tpu.memory_space<vmem>>, %arg4: memref<512x256xbf16, #tpu.memory_space<vmem>>, %arg5: memref<1x256xf32, #tpu.memory_space<vmem>>, %arg6: memref<256x128xbf16, #tpu.memory_space<vmem>>, %arg7: memref<1x128xf32, #tpu.memory_space<vmem>>, %arg8: memref<8x128xf32, #tpu.memory_space<vmem>>, %arg9: memref<1x1xf32, #tpu.memory_space<smem>>) attributes {dimension_semantics = [#tpu.dimension_semantics<parallel>], iteration_bounds = array<i64: 1>, scalar_prefetch = 0 : i64, scratch_operands = 0 : i64, tpu.core_type = #tpu.core_type<tc>, window_params = [{transform_indices = @transform_0, window_bounds = array<i64: 8, 32>}, {pipeline_mode = #tpu.pipeline_mode<synchronous>, transform_indices = @transform_1, window_bounds = array<i64: 32, 512>}, {pipeline_mode = #tpu.pipeline_mode<synchronous>, transform_indices = @transform_2, window_bounds = array<i64: 1, 512>}, {pipeline_mode = #tpu.pipeline_mode<synchronous>, transform_indices = @transform_3, window_bounds = array<i64: 512, 256>}, {pipeline_mode = #tpu.pipeline_mode<synchronous>, transform_indices = @transform_4, window_bounds = array<i64: 1, 256>}, {pipeline_mode = #tpu.pipeline_mode<synchronous>, transform_indices = @transform_5, window_bounds = array<i64: 256, 128>}, {pipeline_mode = #tpu.pipeline_mode<synchronous>, transform_indices = @transform_6, window_bounds = array<i64: 1, 128>}, {transform_indices = @transform_7, window_bounds = array<i64: 8, 128>}, {transform_indices = @transform_8, window_bounds = array<i64: 1, 1>}]} {
    %c0 = arith.constant 0 : index
    %c0_0 = arith.constant 0 : index
    %0 = vector.load %arg1[%c0, %c0_0] : memref<8x32xf32, #tpu.memory_space<vmem>>, vector<8x32xf32>
    %1 = arith.truncf %0 : vector<8x32xf32> to vector<8x32xbf16>
    %c0_1 = arith.constant 0 : index
    %c0_2 = arith.constant 0 : index
    %2 = vector.load %arg2[%c0_1, %c0_2] : memref<32x512xbf16, #tpu.memory_space<vmem>>, vector<32x512xbf16>
    %cst = arith.constant dense<0.000000e+00> : vector<8x512xf32>
    %3 = tpu.matmul %1, %2, %cst {dimension_numbers = #tpu.dot_dimension_numbers<[1], [0], [0], [1], [0, 0, 1, 1], [], []>} : vector<8x32xbf16>, vector<32x512xbf16>, vector<8x512xf32> -> vector<8x512xf32>
    %c0_3 = arith.constant 0 : index
    %c0_4 = arith.constant 0 : index
    %4 = vector.load %arg3[%c0_3, %c0_4] : memref<1x512xf32, #tpu.memory_space<vmem>>, vector<1x512xf32>
    %5 = vector.broadcast %4 : vector<1x512xf32> to vector<8x512xf32>
    %6 = arith.addf %3, %5 : vector<8x512xf32>
    %cst_5 = arith.constant 0.000000e+00 : f32
    %7 = vector.broadcast %cst_5 : f32 to vector<8x512xf32>
    %8 = arith.cmpf ogt, %6, %7 : vector<8x512xf32>
    %cst_6 = arith.constant 2.000000e-02 : f32
    %9 = vector.broadcast %cst_6 : f32 to vector<8x512xf32>
    %10 = arith.mulf %9, %6 : vector<8x512xf32>
    %11 = arith.select %8, %6, %10 : vector<8x512xi1>, vector<8x512xf32>
    %12 = arith.truncf %11 : vector<8x512xf32> to vector<8x512xbf16>
    %c0_7 = arith.constant 0 : index
    %c0_8 = arith.constant 0 : index
    %13 = vector.load %arg4[%c0_7, %c0_8] : memref<512x256xbf16, #tpu.memory_space<vmem>>, vector<512x256xbf16>
    %cst_9 = arith.constant dense<0.000000e+00> : vector<8x256xf32>
    %14 = tpu.matmul %12, %13, %cst_9 {dimension_numbers = #tpu.dot_dimension_numbers<[1], [0], [0], [1], [0, 0, 1, 1], [], []>} : vector<8x512xbf16>, vector<512x256xbf16>, vector<8x256xf32> -> vector<8x256xf32>
    %c0_10 = arith.constant 0 : index
    %c0_11 = arith.constant 0 : index
    %15 = vector.load %arg5[%c0_10, %c0_11] : memref<1x256xf32, #tpu.memory_space<vmem>>, vector<1x256xf32>
    %16 = vector.broadcast %15 : vector<1x256xf32> to vector<8x256xf32>
    %17 = arith.addf %14, %16 : vector<8x256xf32>
    %cst_12 = arith.constant 0.000000e+00 : f32
    %18 = vector.broadcast %cst_12 : f32 to vector<8x256xf32>
    %19 = arith.cmpf ogt, %17, %18 : vector<8x256xf32>
    %cst_13 = arith.constant 2.000000e-02 : f32
    %20 = vector.broadcast %cst_13 : f32 to vector<8x256xf32>
    %21 = arith.mulf %20, %17 : vector<8x256xf32>
    %22 = arith.select %19, %17, %21 : vector<8x256xi1>, vector<8x256xf32>
    %23 = arith.truncf %22 : vector<8x256xf32> to vector<8x256xbf16>
    %c0_14 = arith.constant 0 : index
    %c0_15 = arith.constant 0 : index
    %24 = vector.load %arg6[%c0_14, %c0_15] : memref<256x128xbf16, #tpu.memory_space<vmem>>, vector<256x128xbf16>
    %cst_16 = arith.constant dense<0.000000e+00> : vector<8x128xf32>
    %25 = tpu.matmul %23, %24, %cst_16 {dimension_numbers = #tpu.dot_dimension_numbers<[1], [0], [0], [1], [0, 0, 1, 1], [], []>} : vector<8x256xbf16>, vector<256x128xbf16>, vector<8x128xf32> -> vector<8x128xf32>
    %c0_17 = arith.constant 0 : index
    %c0_18 = arith.constant 0 : index
    %26 = vector.load %arg7[%c0_17, %c0_18] : memref<1x128xf32, #tpu.memory_space<vmem>>, vector<1x128xf32>
    %27 = vector.broadcast %26 : vector<1x128xf32> to vector<8x128xf32>
    %28 = arith.addf %25, %27 : vector<8x128xf32>
    %cst_19 = arith.constant 0.000000e+00 : f32
    %29 = vector.broadcast %cst_19 : f32 to vector<8x128xf32>
    %30 = arith.cmpf ogt, %28, %29 : vector<8x128xf32>
    %cst_20 = arith.constant 2.000000e-02 : f32
    %31 = vector.broadcast %cst_20 : f32 to vector<8x128xf32>
    %32 = arith.mulf %31, %28 : vector<8x128xf32>
    %33 = arith.select %30, %28, %32 : vector<8x128xi1>, vector<8x128xf32>
    %34 = math.tanh %33 : vector<8x128xf32>
    %cst_21 = arith.constant 1.000000e+04 : f32
    %35 = vector.broadcast %cst_21 : f32 to vector<8x128xf32>
    %36 = arith.mulf %34, %35 : vector<8x128xf32>
    %37 = math.roundeven %36 : vector<8x128xf32>
    %cst_22 = arith.constant 1.000000e+04 : f32
    %38 = vector.broadcast %cst_22 : f32 to vector<8x128xf32>
    %39 = arith.divf %37, %38 : vector<8x128xf32>
    %40 = arith.subf %34, %39 : vector<8x128xf32>
    %41 = math.absf %40 : vector<8x128xf32>
    %c0_23 = arith.constant 0 : index
    %c0_24 = arith.constant 0 : index
    %42 = vector.load %arg8[%c0_23, %c0_24] : memref<8x128xf32, #tpu.memory_space<vmem>>, vector<8x128xf32>
    tpu.vector_store %arg8[%c0_23, %c0_24], %39 {strides = array<i32>} : memref<8x128xf32, #tpu.memory_space<vmem>>, vector<8x128xf32>,
    %43 = vector.shape_cast %41 : vector<8x128xf32> to vector<1x8x128xf32>
    %cst_25 = arith.constant dense<0.000000e+00> : vector<1xf32>
    %44 = vector.multi_reduction <add>, %43, %cst_25 [1, 2] : vector<1x8x128xf32> to vector<1xf32>
    %45 = vector.shape_cast %44 : vector<1xf32> to vector<1x1x1xf32>
    %46 = vector.extract %45[0, 0, 0] : f32 from vector<1x1x1xf32>
    %c0_26 = arith.constant 0 : index
    %c0_27 = arith.constant 0 : index
    %47 = memref.load %arg9[%c0_26, %c0_27] : memref<1x1xf32, #tpu.memory_space<smem>>
    memref.store %46, %arg9[%c0_26, %c0_27] : memref<1x1xf32, #tpu.memory_space<smem>>
    return
  }
  func.func @transform_0(%arg0: i32) -> (i32, i32) {
    %c0_i32 = arith.constant 0 : i32
    %c0_i32_0 = arith.constant 0 : i32
    return %arg0, %c0_i32 : i32, i32
  }
  func.func @transform_1(%arg0: i32) -> (i32, i32) {
    %c0_i32 = arith.constant 0 : i32
    %c0_i32_0 = arith.constant 0 : i32
    %c0_i32_1 = arith.constant 0 : i32
    return %c0_i32, %c0_i32_0 : i32, i32
  }
  func.func @transform_2(%arg0: i32) -> (i32, i32) {
    %c0_i32 = arith.constant 0 : i32
    %c0_i32_0 = arith.constant 0 : i32
    %c0_i32_1 = arith.constant 0 : i32
    return %c0_i32, %c0_i32_0 : i32, i32
  }
  func.func @transform_3(%arg0: i32) -> (i32, i32) {
    %c0_i32 = arith.constant 0 : i32
    %c0_i32_0 = arith.constant 0 : i32
    %c0_i32_1 = arith.constant 0 : i32
    return %c0_i32, %c0_i32_0 : i32, i32
  }
  func.func @transform_4(%arg0: i32) -> (i32, i32) {
    %c0_i32 = arith.constant 0 : i32
    %c0_i32_0 = arith.constant 0 : i32
    %c0_i32_1 = arith.constant 0 : i32
    return %c0_i32, %c0_i32_0 : i32, i32
  }
  func.func @transform_5(%arg0: i32) -> (i32, i32) {
    %c0_i32 = arith.constant 0 : i32
    %c0_i32_0 = arith.constant 0 : i32
    %c0_i32_1 = arith.constant 0 : i32
    return %c0_i32, %c0_i32_0 : i32, i32
  }
  func.func @transform_6(%arg0: i32) -> (i32, i32) {
    %c0_i32 = arith.constant 0 : i32
    %c0_i32_0 = arith.constant 0 : i32
    %c0_i32_1 = arith.constant 0 : i32
    return %c0_i32, %c0_i32_0 : i32, i32
  }
  func.func @transform_7(%arg0: i32) -> (i32, i32) {
    %c0_i32 = arith.constant 0 : i32
    %c0_i32_0 = arith.constant 0 : i32
    return %arg0, %c0_i32 : i32, i32
  }
  func.func @transform_8(%arg0: i32) -> (i32, i32) {
    %c0_i32 = arith.constant 0 : i32
    %c0_i32_0 = arith.constant 0 : i32
    return %arg0, %c0_i32 : i32, i32
  }
}

</mosaic_0001>

<bundles_post_ra>
// kernel: tpu_custom_call.1
= control target key start
LH: loop header
LB: loop body
LE: loop exit
PB: predicated region body
PF: predicated region fallthrough
CT: control target
= control target key end

     0   :  { %14 = vsyncpa [#allocation3], 0  ;;  %s1515_s0 = inlined_call_operand.hbm [shape: f32[8,32], index: 0, kind: input, shape index: {}]   ;;  %s1516_s1 = inlined_call_operand.hbm [shape: bf16[32,512], index: 1, kind: input, shape index: {}]   ;;  %s1517_s2 = inlined_call_operand.vmem [shape: f32[1,512], index: 2, kind: input, shape index: {}]   ;;  %s1518_s3 = inlined_call_operand.hbm [shape: bf16[512,256], index: 3, kind: input, shape index: {}]   ;;  %s1519_s4 = inlined_call_operand.vmem [shape: f32[1,256], index: 4, kind: input, shape index: {}]   ;;  %s1520_s5 = inlined_call_operand.hbm [shape: bf16[256,128], index: 5, kind: input, shape index: {}]   ;;  %s1521_s6 = inlined_call_operand.vmem [shape: f32[1,128], index: 6, kind: input, shape index: {}]   ;;  %s1522_s7 = inlined_call_operand.hbm [shape: f32[8,128], index: 7, kind: output, shape index: {0}]   ;;  %s1523_s8 = inlined_call_operand.hbm [shape: f32[1,1], index: 8, kind: output, shape index: {1}]  }
   0x1   :  { %15 = vsyncpa [#allocation7], 0 }
   0x2   :  { %16 = vsyncpa [#allocation10], 0 }
   0x3   :  { %17 = vsyncpa [#allocation4], 0 }
   0x4   :  { %18 = vsyncpa [#allocation5], 0  ;;  %s1360_s27 = smov [#allocation6]   ;;  %s1230_s9 = scalar_lea.hbm %s1516_s1, 1024 }
   0x5   :  { %s34_s28 = sshll.u32 %s1360_s27, 4  ;;  %p1231_p0 = scmp.ne.s32.totalorder %s1516_s1, %s1230_s9  ;;  %s35_s28 = int_to_ptr.vmem [resolvable:$true] %s34_s28 }
   0x6   :  { %p1234_p1 = scmp.lt.u32.totalorder %s1230_s9, %s1516_s1 }
   0x8   :  { %p1236_p2 = pnand %p1234_p1, %p1231_p0 }
   0xa   :  { %1239 = shalt.err (!%p1236_p2)
}
   0xb   :  { %s1240_s14 = scalar_lea.vmem %s35_s28, 1024  ;;  %p1245_p4 = scmp.lt.s32.totalorder %s35_s28, %s35_s28 }
   0xc   :  { %p1241_p3 = scmp.ne.s32.totalorder %s35_s28, %s1240_s14  ;;  %p1246_p5 = scmp.lt.s32.totalorder %s1240_s14, %s1240_s14 }
   0xe   :  { %p1247_p6 = por %p1246_p5, %p1245_p4 }
  0x10   :  { %p1248_p7 = pnand %p1247_p6, %p1241_p3 }
  0x12   :  { %1251 = shalt.err (!%p1248_p7)
}
  0x13   :  { %s1361_s15 = smov 256   ;;  %s1362_s16 = smov 16  }
  0x14   :  { %40 = dma.hbm_to_vmem [thread:$0]  %s1516_s1, 1024, %s35_s28, [#allocation7], %s1361_s15, %s1361_s15, %s1362_s16  }
  0x15   :  { %s1363_s19 = smov [#allocation2]   ;;  %s1364_s21 = smov [#allocation8]  }
  0x16   :  { %s25_s20 = sshll.u32 %s1363_s19, 4  ;;  %s48_s22 = sshll.u32 %s1364_s21, 4  ;;  %s26_s20 = int_to_ptr.vmem [resolvable:$true] %s25_s20  ;;  %s49_s22 = int_to_ptr.vmem [resolvable:$true] %s48_s22 }
  0x17   :  { %s1252_s25 = scalar_lea.hbm %s1515_s0, 128 }
  0x18   :  { %p1253_p8 = scmp.ne.s32.totalorder %s1515_s0, %s1252_s25  ;;  %p1256_p9 = scmp.lt.u32.totalorder %s1252_s25, %s1515_s0 }
  0x1a   :  { %p1258_p10 = pnand %p1256_p9, %p1253_p8 }
  0x1c   :  { %1261 = shalt.err (!%p1258_p10)
}
  0x1d   :  { %s1262_s1 = scalar_lea.vmem %s26_s20, 128  ;;  %p1267_p12 = scmp.lt.s32.totalorder %s26_s20, %s26_s20 }
  0x1e   :  { %p1263_p11 = scmp.ne.s32.totalorder %s26_s20, %s1262_s1  ;;  %p1268_p13 = scmp.lt.s32.totalorder %s1262_s1, %s1262_s1 }
  0x20   :  { %p1269_p0 = por %p1268_p13, %p1267_p12 }
  0x22   :  { %p1270_p1 = pnand %p1269_p0, %p1263_p11 }
  0x24   :  { %1273 = shalt.err (!%p1270_p1)
}
  0x25   :  { %28 = dma.hbm_to_vmem [thread:$0]  %s1515_s0, 128, %s26_s20, [#allocation3]  }
  0x26   :  { %s1274_s12 = scalar_lea.hbm %s1518_s3, 8192 }
  0x27   :  { %p1275_p2 = scmp.ne.s32.totalorder %s1518_s3, %s1274_s12  ;;  %p1278_p3 = scmp.lt.u32.totalorder %s1274_s12, %s1518_s3 }
  0x29   :  { %p1280_p4 = pnand %p1278_p3, %p1275_p2 }
  0x2b   :  { %1283 = shalt.err (!%p1280_p4)
}
  0x2c   :  { %s1284_s17 = scalar_lea.vmem %s49_s22, 8192  ;;  %p1289_p6 = scmp.lt.s32.totalorder %s49_s22, %s49_s22 }
  0x2d   :  { %p1285_p5 = scmp.ne.s32.totalorder %s49_s22, %s1284_s17  ;;  %p1290_p7 = scmp.lt.s32.totalorder %s1284_s17, %s1284_s17 }
  0x2f   :  { %p1291_p8 = por %p1290_p7, %p1289_p6 }
  0x31   :  { %p1292_p9 = pnand %p1291_p8, %p1285_p5 }
  0x33   :  { %1295 = shalt.err (!%p1292_p9)
}
  0x34   :  { %s1365_s0 = smov 128   ;;  %s1366_s18 = smov 8  }
  0x35   :  { %54 = dma.hbm_to_vmem [thread:$0]  %s1518_s3, 8192, %s49_s22, [#allocation7], %s1365_s0, %s1365_s0, %s1366_s18  }
  0x36   :  { %s1367_s21 = smov [#allocation9]   ;;  %s1296_s26 = scalar_lea.hbm %s1520_s5, 2048 }
  0x37   :  { %s62_s23 = sshll.u32 %s1367_s21, 4  ;;  %p1297_p10 = scmp.ne.s32.totalorder %s1520_s5, %s1296_s26  ;;  %s63_s23 = int_to_ptr.vmem [resolvable:$true] %s62_s23 }
  0x38   :  { %p1300_p11 = scmp.lt.u32.totalorder %s1296_s26, %s1520_s5 }
  0x3a   :  { %p1302_p12 = pnand %p1300_p11, %p1297_p10 }
  0x3c   :  { %1305 = shalt.err (!%p1302_p12)
}
  0x3d   :  { %s1306_s28 = scalar_lea.vmem %s63_s23, 2048  ;;  %p1311_p0 = scmp.lt.s32.totalorder %s63_s23, %s63_s23 }
  0x3e   :  { %p1307_p13 = scmp.ne.s32.totalorder %s63_s23, %s1306_s28  ;;  %p1312_p1 = scmp.lt.s32.totalorder %s1306_s28, %s1306_s28 }
  0x40   :  { %p1313_p2 = por %p1312_p1, %p1311_p0 }
  0x42   :  { %p1314_p3 = pnand %p1313_p2, %p1307_p13 }
  0x44   :  { %1317 = shalt.err (!%p1314_p3)
}
  0x45   :  { %s1368_s3 = smov 64   ;;  %s1369_s22 = smov 4  }
  0x46   :  { %68 = dma.hbm_to_vmem [thread:$0]  %s1520_s5, 2048, %s63_s23, [#allocation10], %s1368_s3, %s1368_s3, %s1369_s22  }
  0x47   :  { %1350 = dma.done.wait [#allocation3], 128  }
  0x48   :  { %1351 = vsyncadd [#allocation3], 4294967168 }
  0x49   :  { %1352 = dma.done.wait [#allocation7], 9216  }
  0x4a   :  { %1353 = vsyncadd [#allocation7], 4294958080 }
  0x4b   :  { %1354 = dma.done.wait [#allocation10], 2048  }
  0x4c   :  { %1355 = vsyncadd [#allocation10], 4294965248  ;;  %v1370_v0 = vmov 0   ;;  %v1104_v1 = vld [vmem:[#allocation6 + $0x4] ss:$16 sps:$4 sm:$0xff]   ;;  %v84_v5 = vld [vmem:[#allocation2] sm:$0xff] }
  0x4d   :  { %192 = vmatprep.mubr.bf16.mxu0 %v1370_v0  ;;  %v1106_v2 = vld [vmem:[#allocation6] ss:$16 sps:$4 sm:$0xff]   ;;  %160 = vmatprep.subr.bf16.mxu0 %v1104_v1  ;;  %v1107_v3 = vld [vmem:[#allocation6 + $0x24] ss:$16 sps:$4 sm:$0xff]   ;;  %v1112_v6 = vld [vmem:[#allocation6 + $0xc] ss:$16 sps:$4 sm:$0xff]   ;;  %v85_v8 = vpack.c.bf16 %v84_v5, %v84_v5 }
  0x4e   :  { %v1109_v4 = vld [vmem:[#allocation6 + $0x20] ss:$16 sps:$4 sm:$0xff]   ;;  %161 = vmatpush1.bf16.msra.mxu0 %v1106_v2  ;;  %v1110_v7 = vld [vmem:[#allocation6 + $0x8] ss:$16 sps:$4 sm:$0xff]   ;;  %v1116_v9 = vld [vmem:[#allocation8 + $0x4] ss:$8 sps:$4 sm:$0xff]  }
  0x4f   :  { %162 = vmatprep.subr.bf16.mxu0 %v1107_v3  ;;  %v1118_v10 = vld [vmem:[#allocation8] ss:$8 sps:$4 sm:$0xff]   ;;  %vm156_vm0 = vcmask 261120   ;;  %v1119_v11 = vld [vmem:[#allocation8 + $0x14] ss:$8 sps:$4 sm:$0xff]   ;;  %654 = vmatprep.subr.bf16.mxu1 %v1116_v9  ;;  %s1371_s14 = smov [#allocation11]  }
  0x50   :  { %v1115_v12 = vld [vmem:[#allocation6 + $0x2c] ss:$16 sps:$4 sm:$0xff]   ;;  %655 = vmatpush1.bf16.msra.mxu1 %v1118_v10  ;;  %v1121_v13 = vld [vmem:[#allocation8 + $0x10] ss:$8 sps:$4 sm:$0xff]   ;;  %v1127_v17 = vld [vmem:[#allocation8 + $0x20] ss:$8 sps:$4 sm:$0xff]  }
  0x51   :  { %656 = vmatprep.subr.bf16.mxu1 %v1119_v11  ;;  %v1122_v14 = vld [vmem:[#allocation8 + $0x24] ss:$8 sps:$4 sm:$0xff]   ;;  %v1113_v15 = vld [vmem:[#allocation6 + $0x28] ss:$16 sps:$4 sm:$0xff]   ;;  %v1128_v18 = vld [vmem:[#allocation8 + $0x34] ss:$8 sps:$4 sm:$0xff]  }
  0x52   :  { %163 = vmatpush1.bf16.msra.mxu0 %v1109_v4  ;;  %v1126_v16 = vld [vmem:[#allocation8 + $0x104] ss:$8 sps:$4 sm:$0xff]   ;;  %v1124_v19 = vld [vmem:[#allocation8 + $0x100] ss:$8 sps:$4 sm:$0xff]   ;;  %v1132_v20 = vld [vmem:[#allocation8 + $0x114] ss:$8 sps:$4 sm:$0xff]  }
  0x53   :  { %201 = vmatprep.subr.bf16.mxu0 %v1112_v6  ;;  %v1133_v21 = vld [vmem:[#allocation8 + $0x30] ss:$8 sps:$4 sm:$0xff]   ;;  %v1134_v22 = vld [vmem:[#allocation8 + $0x44] ss:$8 sps:$4 sm:$0xff]   ;;  %v1139_v25 = vld [vmem:[#allocation8 + $0x40] ss:$8 sps:$4 sm:$0xff]  }
  0x54   :  { %657 = vmatpush1.bf16.msra.mxu1 %v1121_v13  ;;  %v1130_v23 = vld [vmem:[#allocation8 + $0x110] ss:$8 sps:$4 sm:$0xff]   ;;  %v1138_v24 = vld [vmem:[#allocation8 + $0x124] ss:$8 sps:$4 sm:$0xff]   ;;  %v1140_v26 = vld [vmem:[#allocation8 + $0x54] ss:$8 sps:$4 sm:$0xff]  }
  0x55   :  { %979 = vmatmul.mubr.msk.bf16.vlgmr.msra.gmra.mrb[0].mxu0 %vm156_vm0, %v85_v8  ;;  %658 = vmatprep.subr.bf16.mxu1 %v1122_v14  ;;  %v1136_v27 = vld [vmem:[#allocation8 + $0x120] ss:$8 sps:$4 sm:$0xff]   ;;  %v1144_v28 = vld [vmem:[#allocation8 + $0x134] ss:$8 sps:$4 sm:$0xff]   ;;  %v1145_v29 = vld [vmem:[#allocation8 + $0x50] ss:$8 sps:$4 sm:$0xff]  }
  0x56   :  { %202 = vmatpush1.bf16.msra.mxu0 %v1110_v7  ;;  %233 = vmatprep.mubr.bf16.mxu0 %v1370_v0  ;;  %v1146_v30 = vld [vmem:[#allocation8 + $0x64] ss:$8 sps:$4 sm:$0xff]   ;;  %v1142_v31 = vld [vmem:[#allocation8 + $0x130] ss:$8 sps:$4 sm:$0xff]   ;;  %v1151_v33 = vld [vmem:[#allocation8 + $0x60] ss:$8 sps:$4 sm:$0xff]  }
  0x57   :  { %203 = vmatprep.subr.bf16.mxu0 %v1115_v12  ;;  %v1150_v32 = vld [vmem:[#allocation8 + $0x144] ss:$8 sps:$4 sm:$0xff]   ;;  %v1152_v34 = vld [vmem:[#allocation8 + $0x74] ss:$8 sps:$4 sm:$0xff]   ;;  %v1148_v35 = vld [vmem:[#allocation8 + $0x140] ss:$8 sps:$4 sm:$0xff]   ;;  %v96_v12 = vlaneseq }
  0x58   :  { %659 = vmatpush1.bf16.msra.mxu1 %v1127_v17  ;;  %v1156_v36 = vld [vmem:[#allocation8 + $0x154] ss:$8 sps:$4 sm:$0xff]   ;;  %v1157_v37 = vld [vmem:[#allocation8 + $0x70] ss:$8 sps:$4 sm:$0xff]   ;;  %v1158_v38 = vld [vmem:[#allocation8 + $0x84] ss:$8 sps:$4 sm:$0xff]  }
  0x59   :  { %660 = vmatprep.subr.bf16.mxu1 %v1128_v18  ;;  %v1154_v39 = vld [vmem:[#allocation8 + $0x150] ss:$8 sps:$4 sm:$0xff]   ;;  %v1162_v40 = vld [vmem:[#allocation8 + $0x164] ss:$8 sps:$4 sm:$0xff]   ;;  %v1163_v41 = vld [vmem:[#allocation8 + $0x80] ss:$8 sps:$4 sm:$0xff]  }
  0x5a   :  { %204 = vmatpush1.bf16.msra.mxu0 %v1113_v15  ;;  %v1164_v42 = vld [vmem:[#allocation8 + $0x94] ss:$8 sps:$4 sm:$0xff]   ;;  %v1160_v43 = vld [vmem:[#allocation8 + $0x160] ss:$8 sps:$4 sm:$0xff]   ;;  %v1169_v45 = vld [vmem:[#allocation8 + $0x90] ss:$8 sps:$4 sm:$0xff]  }
  0x5b   :  { %695 = vmatprep.subr.bf16.mxu0 %v1126_v16  ;;  %v1168_v44 = vld [vmem:[#allocation8 + $0x174] ss:$8 sps:$4 sm:$0xff]   ;;  %v1170_v46 = vld [vmem:[#allocation8 + $0xa4] ss:$8 sps:$4 sm:$0xff]   ;;  %v1166_v47 = vld [vmem:[#allocation8 + $0x170] ss:$8 sps:$4 sm:$0xff]  }
  0x5c   :  { %661 = vmatpush1.bf16.msra.mxu1 %v1133_v21  ;;  %v1174_v48 = vld [vmem:[#allocation8 + $0x184] ss:$8 sps:$4 sm:$0xff]   ;;  %v1175_v49 = vld [vmem:[#allocation8 + $0xa0] ss:$8 sps:$4 sm:$0xff]   ;;  %v1176_v50 = vld [vmem:[#allocation8 + $0xb4] ss:$8 sps:$4 sm:$0xff]  }
  0x5d   :  { %980 = vmatmul.mubr.msk.bf16.vlgmr.msra.gmra.mrb[4].mxu0 %vm156_vm0, %v85_v8  ;;  %662 = vmatprep.subr.bf16.mxu1 %v1134_v22  ;;  %v1172_v51 = vld [vmem:[#allocation8 + $0x180] ss:$8 sps:$4 sm:$0xff]   ;;  %v1180_v52 = vld [vmem:[#allocation8 + $0x194] ss:$8 sps:$4 sm:$0xff]   ;;  %v1181_v53 = vld [vmem:[#allocation8 + $0xb0] ss:$8 sps:$4 sm:$0xff]  }
  0x5e   :  { %696 = vmatpush1.bf16.msra.mxu0 %v1124_v19  ;;  %v1182_v54 = vld [vmem:[#allocation8 + $0xc4] ss:$8 sps:$4 sm:$0xff]   ;;  %v1178_v55 = vld [vmem:[#allocation8 + $0x190] ss:$8 sps:$4 sm:$0xff]   ;;  %v1187_v57 = vld [vmem:[#allocation8 + $0xc0] ss:$8 sps:$4 sm:$0xff]  }
  0x5f   :  { %697 = vmatprep.subr.bf16.mxu0 %v1132_v20  ;;  %v1186_v56 = vld [vmem:[#allocation8 + $0x1a4] ss:$8 sps:$4 sm:$0xff]   ;;  %v1188_v58 = vld [vmem:[#allocation8 + $0xd4] ss:$8 sps:$4 sm:$0xff]   ;;  %v1184_v59 = vld [vmem:[#allocation8 + $0x1a0] ss:$8 sps:$4 sm:$0xff]  }
  0x60   :  { %663 = vmatpush1.bf16.msra.mxu1 %v1139_v25  ;;  %v1192_v60 = vld [vmem:[#allocation8 + $0x1b4] ss:$8 sps:$4 sm:$0xff]   ;;  %v1193_v61 = vld [vmem:[#allocation8 + $0xd0] ss:$8 sps:$4 sm:$0xff]   ;;  %v1194_v63 = vld [vmem:[#allocation8 + $0xe4] ss:$8 sps:$4 sm:$0xff]  }
  0x61   :  { %664 = vmatprep.subr.bf16.mxu1 %v1140_v26  ;;  %v1190_v62 = vld [vmem:[#allocation8 + $0x1b0] ss:$8 sps:$4 sm:$0xff]   ;;  %v1198_v0 = vld [vmem:[#allocation8 + $0x1c4] ss:$8 sps:$4 sm:$0xff]   ;;  %v1196_v1 = vld [vmem:[#allocation8 + $0x1c0] ss:$8 sps:$4 sm:$0xff]  }
  0x62   :  { %698 = vmatpush1.bf16.msra.mxu0 %v1130_v23  ;;  %v1199_v2 = vld [vmem:[#allocation8 + $0xe0] ss:$8 sps:$4 sm:$0xff]   ;;  %v1200_v3 = vld [vmem:[#allocation8 + $0xf4] ss:$8 sps:$4 sm:$0xff]   ;;  %v1202_v4 = vld [vmem:[#allocation8 + $0x1d0] ss:$8 sps:$4 sm:$0xff]  }
  0x63   :  { %699 = vmatprep.subr.bf16.mxu0 %v1138_v24  ;;  %v1204_v5 = vld [vmem:[#allocation8 + $0x1d4] ss:$8 sps:$4 sm:$0xff]   ;;  %v1205_v6 = vld [vmem:[#allocation8 + $0xf0] ss:$8 sps:$4 sm:$0xff]   ;;  %v1208_v7 = vld [vmem:[#allocation8 + $0x1e4] ss:$8 sps:$4 sm:$0xff]  }
  0x64   :  { %665 = vmatpush1.bf16.msra.mxu1 %v1145_v29  ;;  %v1206_v8 = vld [vmem:[#allocation8 + $0x1e0] ss:$8 sps:$4 sm:$0xff]   ;;  %v1211_v9 = vld [vmem:[#allocation8 + $0x1f4] ss:$8 sps:$4 sm:$0xff]   ;;  %v1209_v10 = vld [vmem:[#allocation8 + $0x1f0] ss:$8 sps:$4 sm:$0xff]  }
  0x65   :  { %666 = vmatprep.subr.bf16.mxu1 %v1146_v30  ;;  %v1212_v11 = vld [vmem:[#allocation9 + $0x40] sm:$0xff]   ;;  %v1468_v13 = vshrl.u32 %v96_v12, 7  ;;  %v94_v15 = vld [vmem:[%s1517_s2] sm:$0xf]  ;;  %s947_s15 = sshll.u32 %s1371_s14, 4  ;;  %s948_s15 = int_to_ptr.vmem [resolvable:$true] %s947_s15 }
  0x66   :  { %700 = vmatpush1.bf16.msra.mxu0 %v1136_v27  ;;  %p1323_p5 = scmp.lt.s32.totalorder %s948_s15, %s948_s15 }
  0x67   :  { %701 = vmatprep.subr.bf16.mxu0 %v1144_v28  ;;  %v98_v14 = vsub.s32 0, %v1468_v13  ;;  %v102_v16 = vsub.s32 1, %v1468_v13  ;;  %v106_v22 = vsub.s32 2, %v1468_v13  ;;  %v110_v25 = vsub.s32 3, %v1468_v13 }
  0x68   :  { %667 = vmatpush1.bf16.msra.mxu1 %v1151_v33 }
  0x69   :  { %668 = vmatprep.subr.bf16.mxu1 %v1152_v34  ;;  %v99_v17 = vrot.slane %v94_v15, %v98_v14  ;;  %v103_v18 = vrot.slane %v94_v15, %v102_v16  ;;  %v107_v29 = vrot.slane %v94_v15, %v106_v22  ;;  %v1213_v34 = vld [vmem:[#allocation9] sm:$0xff]  }
  0x6a   :  { %702 = vmatpush1.bf16.msra.mxu0 %v1142_v31  ;;  %v111_v31 = vrot.slane %v94_v15, %v110_v25 }
  0x6b   :  { %703 = vmatprep.subr.bf16.mxu0 %v1150_v32 }
  0x6c   :  { %669 = vmatpush1.bf16.msra.mxu1 %v1157_v37  ;;  %v1214_v37 = vld [vmem:[#allocation9 + $0x48] sm:$0xff]  }
  0x6d   :  { %670 = vmatprep.subr.bf16.mxu1 %v1158_v38 }
  0x6e   :  { %704 = vmatpush1.bf16.msra.mxu0 %v1148_v35 }
  0x6f   :  { %705 = vmatprep.subr.bf16.mxu0 %v1156_v36 }
  0x70   :  { %671 = vmatpush1.bf16.msra.mxu1 %v1163_v41 }
  0x71   :  { %672 = vmatprep.subr.bf16.mxu1 %v1164_v42 }
  0x72   :  { %706 = vmatpush1.bf16.msra.mxu0 %v1154_v39 }
  0x73   :  { %707 = vmatprep.subr.bf16.mxu0 %v1162_v40 }
  0x74   :  { %673 = vmatpush1.bf16.msra.mxu1 %v1169_v45 }
  0x75   :  { %674 = vmatprep.subr.bf16.mxu1 %v1170_v46  ;;  %v1216_v46 = vld [vmem:[#allocation9 + $0x50] sm:$0xff]  }
  0x76   :  { %708 = vmatpush1.bf16.msra.mxu0 %v1160_v43 }
  0x77   :  { %709 = vmatprep.subr.bf16.mxu0 %v1168_v44  ;;  %v1215_v44 = vld [vmem:[#allocation9 + $0x8] sm:$0xff]  }
  0x78   :  { %675 = vmatpush1.bf16.msra.mxu1 %v1175_v49 }
  0x79   :  { %676 = vmatprep.subr.bf16.mxu1 %v1176_v50  ;;  %v1217_v50 = vld [vmem:[#allocation9 + $0x10] sm:$0xff]  }
  0x7a   :  { %710 = vmatpush1.bf16.msra.mxu0 %v1166_v47 }
  0x7b   :  { %711 = vmatprep.subr.bf16.mxu0 %v1174_v48 }
  0x7c   :  { %677 = vmatpush1.bf16.msra.mxu1 %v1181_v53  ;;  %v1219_v53 = vld [vmem:[#allocation9 + $0x18] sm:$0xff]  }
  0x7d   :  { %678 = vmatprep.subr.bf16.mxu1 %v1182_v54  ;;  %v1220_v54 = vld [vmem:[#allocation9 + $0x60] sm:$0xff]  }
  0x7e   :  { %712 = vmatpush1.bf16.msra.mxu0 %v1172_v51 }
  0x7f   :  { %713 = vmatprep.subr.bf16.mxu0 %v1180_v52  ;;  %v1218_v52 = vld [vmem:[#allocation9 + $0x58] sm:$0xff]  }
  0x80   :  { %679 = vmatpush1.bf16.msra.mxu1 %v1187_v57  ;;  %v1223_v57 = vld [vmem:[#allocation9 + $0x28] sm:$0xff]  }
  0x81   :  { %680 = vmatprep.subr.bf16.mxu1 %v1188_v58  ;;  %v1224_v58 = vld [vmem:[#allocation9 + $0x70] sm:$0xff]  }
  0x82   :  { %714 = vmatpush1.bf16.msra.mxu0 %v1178_v55  ;;  %v1221_v55 = vld [vmem:[#allocation9 + $0x20] sm:$0xff]  }
  0x83   :  { %715 = vmatprep.subr.bf16.mxu0 %v1186_v56  ;;  %v1222_v56 = vld [vmem:[#allocation9 + $0x68] sm:$0xff]  }
  0x84   :  { %681 = vmatpush1.bf16.msra.mxu1 %v1193_v61  ;;  %v1227_v61 = vld [vmem:[#allocation9 + $0x38] sm:$0xff]  }
  0x85   :  { %682 = vmatprep.subr.bf16.mxu1 %v1194_v63 }
  0x86   :  { %716 = vmatpush1.bf16.msra.mxu0 %v1184_v59  ;;  %v1225_v59 = vld [vmem:[#allocation9 + $0x30] sm:$0xff]  }
  0x87   :  { %717 = vmatprep.subr.bf16.mxu0 %v1192_v60  ;;  %v1226_v60 = vld [vmem:[#allocation9 + $0x78] sm:$0xff]  }
  0x88   :  { %683 = vmatpush1.bf16.msra.mxu1 %v1199_v2 }
  0x89   :  { %684 = vmatprep.subr.bf16.mxu1 %v1200_v3 }
  0x8a   :  { %718 = vmatpush1.bf16.msra.mxu0 %v1190_v62  ;;  %v322_v62 = vld [vmem:[%s1519_s4] sm:$0x3] }
  0x8b   :  { %719 = vmatprep.subr.bf16.mxu0 %v1198_v0  ;;  %v327_v2 = vrot.slane %v322_v62, %v98_v14 }
  0x8c   :  { %685 = vmatpush1.bf16.msra.mxu1 %v1205_v6 }
  0x8d   :  { %1062 = vmatprep.subr.bf16.mxu1 %v1212_v11 }
  0x8e   :  { %720 = vmatpush1.bf16.msra.mxu0 %v1196_v1 }
  0x8f   :  { %721 = vmatprep.subr.bf16.mxu0 %v1204_v5 }
  0x92   :  { %722 = vmatpush1.bf16.msra.mxu0 %v1202_v4  ;;  %v331_v4 = vrot.slane %v322_v62, %v102_v16  ;;  %v1045_v16 = vld [vmem:[%s1521_s6] ss:$0 sm:$0xff]  ;;  %s1318_s6 = scalar_lea.vmem %s948_s15, 128 }
  0x93   :  { %723 = vmatprep.subr.bf16.mxu0 %v1208_v7  ;;  %p1319_p4 = scmp.ne.s32.totalorder %s948_s15, %s1318_s6  ;;  %p1324_p6 = scmp.lt.s32.totalorder %s1318_s6, %s1318_s6 }
  0x95   :  { %p1325_p7 = por %p1324_p6, %p1323_p5 }
  0x96   :  { %724 = vmatpush1.bf16.msra.mxu0 %v1206_v8 }
  0x97   :  { %725 = vmatprep.subr.bf16.mxu0 %v1211_v9  ;;  %p1326_p8 = pnand %p1325_p7, %p1319_p4 }
  0x9a   :  { %726 = vmatpush1.bf16.msra.mxu0 %v1209_v10 }
 0x128   :  { %v194_v19 = vpop.f32.mrb[0].mxu0 }
 0x129   :  { %v195_v20 = vadd.f32 %v194_v19, %v99_v17  ;;  %v196_v21 = vpop.f32.mrb[1].mxu0 }
 0x12a   :  { %v197_v23 = vadd.f32 %v196_v21, %v103_v18  ;;  %v198_v24 = vpop.f32.mrb[2].mxu0 }
 0x12b   :  { %vm242_vm1 = vcmp.gt.f32.partialorder %v195_v20, 0.0  ;;  %v246_v26 = vmul.f32 0.02, %v195_v20  ;;  %v199_v27 = vpop.f32.mrb[3].mxu0 }
 0x12c   :  { %vm243_vm2 = vcmp.gt.f32.partialorder %v197_v23, 0.0  ;;  %v247_v28 = vmul.f32 0.02, %v197_v23 }
 0x12d   :  { %v250_v30 = vsel %vm242_vm1, %v195_v20, %v246_v26 }
 0x12e   :  { %v251_v32 = vsel %vm243_vm2, %v197_v23, %v247_v28  ;;  %v254_v36 = vpack.c.bf16 %v250_v30, %v250_v30 }
 0x12f   :  { %v255_v33 = vpack.c.bf16 %v251_v32, %v251_v32 }
 0x130   :  { %v235_v35 = vpop.f32.mrb[4].mxu0 }
 0x131   :  { %v236_v38 = vadd.f32 %v235_v35, %v107_v29  ;;  %v237_v39 = vpop.f32.mrb[5].mxu0  ;;  %686 = vmatprep.mubr.bf16.mxu1 %v255_v33 }
 0x132   :  { %v238_v40 = vadd.f32 %v237_v39, %v111_v31  ;;  %v239_v41 = vpop.f32.mrb[6].mxu0  ;;  %687 = vmatmul.mubr.bf16.vlgmr.msra.gmra.mrb[0].mxu1 %v254_v36 }
 0x133   :  { %vm244_vm3 = vcmp.gt.f32.partialorder %v236_v38, 0.0  ;;  %v248_v42 = vmul.f32 0.02, %v236_v38  ;;  %v240_v43 = vpop.f32.mrb[7].mxu0  ;;  %1063 = vmatpush3.bf16.msra.mxu1 %v1213_v34 }
 0x134   :  { %vm245_vm4 = vcmp.gt.f32.partialorder %v238_v40, 0.0  ;;  %v249_v45 = vmul.f32 0.02, %v238_v40  ;;  %1064 = vmatprep.subr.bf16.mxu1 %v1214_v37 }
 0x135   :  { %v252_v47 = vsel %vm244_vm3, %v236_v38, %v248_v42 }
 0x136   :  { %v253_v48 = vsel %vm245_vm4, %v238_v40, %v249_v45  ;;  %v256_v51 = vpack.c.bf16 %v252_v47, %v252_v47 }
 0x137   :  { %v257_v49 = vpack.c.bf16 %v253_v48, %v253_v48  ;;  %1065 = vmatpush3.bf16.msra.mxu1 %v1215_v44 }
 0x138   :  { %1066 = vmatprep.subr.bf16.mxu1 %v1216_v46 }
 0x139   :  { %727 = vmatprep.mubr.bf16.mxu0 %v257_v49 }
 0x13a   :  { %728 = vmatmul.mubr.bf16.vlgmr.msra.gmra.mrb[8].mxu0 %v256_v51 }
 0x13b   :  { %1067 = vmatpush3.bf16.msra.mxu1 %v1217_v50 }
 0x13c   :  { %1068 = vmatprep.subr.bf16.mxu1 %v1218_v52 }
 0x13f   :  { %1069 = vmatpush3.bf16.msra.mxu1 %v1219_v53 }
 0x140   :  { %1070 = vmatprep.subr.bf16.mxu1 %v1220_v54 }
 0x143   :  { %1071 = vmatpush3.bf16.msra.mxu1 %v1221_v55 }
 0x144   :  { %1072 = vmatprep.subr.bf16.mxu1 %v1222_v56 }
 0x147   :  { %1073 = vmatpush3.bf16.msra.mxu1 %v1223_v57 }
 0x148   :  { %1074 = vmatprep.subr.bf16.mxu1 %v1224_v58 }
 0x14b   :  { %1075 = vmatpush3.bf16.msra.mxu1 %v1225_v59 }
 0x14c   :  { %1076 = vmatprep.subr.bf16.mxu1 %v1226_v60 }
 0x14f   :  { %1077 = vmatpush3.bf16.msra.mxu1 %v1227_v61 }
 0x205   :  { %v688_v63 = vpop.f32.mrb[0].mxu1 }
 0x206   :  { %v690_v0 = vpop.f32.mrb[1].mxu1  ;;  %v689_v5 = vadd.f32 %v688_v63, %v327_v2 }
 0x207   :  { %v692_v1 = vpop.f32.mrb[2].mxu1  ;;  %v691_v6 = vadd.f32 %v690_v0, %v331_v4 }
 0x208   :  { %v693_v3 = vpop.f32.mrb[3].mxu1 }
 0x20d   :  { %v729_v7 = vpop.f32.mrb[8].mxu0 }
 0x20e   :  { %v730_v8 = vadd.f32 %v729_v7, %v689_v5  ;;  %v731_v9 = vpop.f32.mrb[9].mxu0 }
 0x20f   :  { %v732_v10 = vadd.f32 %v731_v9, %v691_v6  ;;  %v733_v11 = vpop.f32.mrb[10].mxu0 }
 0x210   :  { %vm736_vm5 = vcmp.gt.f32.partialorder %v730_v8, 0.0  ;;  %v738_v12 = vmul.f32 0.02, %v730_v8  ;;  %v734_v15 = vpop.f32.mrb[11].mxu0 }
 0x211   :  { %vm737_vm6 = vcmp.gt.f32.partialorder %v732_v10, 0.0  ;;  %v739_v17 = vmul.f32 0.02, %v732_v10 }
 0x212   :  { %v740_v18 = vsel %vm736_vm5, %v730_v8, %v738_v12 }
 0x213   :  { %v741_v19 = vsel %vm737_vm6, %v732_v10, %v739_v17  ;;  %v742_v14 = vpack.c.bf16 %v740_v18, %v740_v18 }
 0x214   :  { %v743_v20 = vpack.c.bf16 %v741_v19, %v741_v19 }
 0x216   :  { %911 = vmatprep.mubr.bf16.mxu1 %v743_v20 }
 0x217   :  { %912 = vmatmul.mubr.bf16.vlgmr.msra.gmra.mrb[4].mxu1 %v742_v14 }
 0x2ea   :  { %v1078_v13 = vpop.f32.mrb[4].mxu1 }
 0x2eb   :  { %v1079_v21 = vpop.f32.mrb[5].mxu1 }
 0x2ec   :  { %v1080_v22 = vadd.f32 %v1079_v21, %v1078_v13  ;;  %v1081_v23 = vpop.f32.mrb[6].mxu1 }
 0x2ed   :  { %v1082_v24 = vpop.f32.mrb[7].mxu1 }
 0x2ee   :  { %v914_v25 = vadd.f32 %v1080_v22, %v1045_v16 }
 0x2f0   :  { %vm919_vm7 = vcmp.gt.f32.partialorder %v914_v25, 0.0  ;;  %v920_v26 = vmul.f32 0.02, %v914_v25 }
 0x2f2   :  { %v921_v27 = vsel %vm919_vm7, %v914_v25, %v920_v26 }
 0x2f3   :  { %1228 = vtanh.f32 %v921_v27 }
 0x2fd   :  { %v1229_v28 = vpop.eup %1228 }
 0x2fe   :  { %v923_v29 = vmul.f32 10000.0, %v1229_v28 }
 0x300   :  { %v1088_v30 = vround.rtne.f32 %v923_v29 }
 0x302   :  { %v926_v31 = vmul.f32 0.0001, %v1088_v30 }
 0x304   :  { %v927_v32 = vsub.f32 %v1229_v28, %v926_v31  ;;  %929 = vst [vmem:[#allocation11] sm:$0xff] %v926_v31 }
 0x306   :  { %v928_v33 = vand.u32 2147483647, %v927_v32 }
 0x308   :  { %930 = vadd.xlane.f32.xlu0 %v928_v33 }
 0x309   :  { %1329 = shalt.err (!%p1326_p8)
}
 0x30a   :  { %s1330_s0 = scalar_lea.hbm %s1522_s7, 128 }
 0x30b   :  { %p1331_p9 = scmp.ne.s32.totalorder %s1522_s7, %s1330_s0  ;;  %p1334_p10 = scmp.lt.u32.totalorder %s1330_s0, %s1522_s7 }
 0x30d   :  { %p1336_p11 = pnand %p1334_p10, %p1331_p9 }
 0x30f   :  { %1339 = shalt.err (!%p1336_p11)
}
 0x310   :  { %950 = dma.vmem_to_hbm [thread:$0]  %s948_s15, 128, %s1522_s7, [#allocation4]  }
 0x311   :  { %s1340_s29 = scalar_lea.hbm %s1523_s8, 16 }
 0x312   :  { %p1341_p12 = scmp.ne.s32.totalorder %s1523_s8, %s1340_s29  ;;  %p1344_p13 = scmp.lt.u32.totalorder %s1340_s29, %s1523_s8 }
 0x314   :  { %p1346_p0 = pnand %p1344_p13, %p1341_p12 }
 0x395   :  { %v931_v34 = vpop.xlane.xlu0 %930 }
 0x396   :  { %v932_v35 = vrot.slane %v931_v34, 4 }
 0x398   :  { %v933_v36 = vadd.f32 %v932_v35, %v931_v34 }
 0x39a   :  { %v934_v37 = vrot.slane %v933_v36, 2 }
 0x39c   :  { %v935_v38 = vadd.f32 %v934_v37, %v933_v36 }
 0x39e   :  { %v936_v39 = vrot.slane %v935_v38, 1 }
 0x3a0   :  { %v937_v40 = vadd.f32 %v936_v39, %v935_v38 }
 0x3a2   :  { %1089 = vpush %v937_v40 }
 0x3d3   :  { %s1090_s25 = spop %1089 }
 0x3d4   :  { %940 = sst [smem:[#allocation12]] %s1090_s25 }
 0x3d5   :  { %1349 = shalt.err (!%p1346_p0)
}
 0x3d6   :  { %s1372_s3 = smov [#allocation12]  }
 0x3d7   :  { %958 = dma.smem_to_hbm %s1372_s3, 16, %s1523_s8, [#allocation5]  }
 0x3d8   :  { %1356 = dma.done.wait [#allocation4], 128  }
 0x3d9   :  { %1357 = vsyncadd [#allocation4], 4294967168 }
 0x3da   :  { %1358 = dma.done.wait [#allocation5], 16  }
 0x3db   :  { %1359 = vsyncadd [#allocation5], 4294967280 }
 0x3dc   :  { %965 = sfence }
 0x3dd   :  { %966 = vsyncpa [#allocation3], 1 }
 0x3de   :  { %967 = vsyncpa [#allocation7], 1 }
 0x3df   :  { %968 = vsyncpa [#allocation10], 1 }
 0x3e0   :  { %969 = vsyncpa [#allocation4], 1 }
 0x3e1   :  { %970 = vsyncpa [#allocation5], 1 }

</bundles_post_ra>
